<compile_context>
chip_gen: v6e
topology: v6e:2x2x1
jax: 0.10.0
libtpu: 0.0.40
codegen_flags: <defaults>
</compile_context>

<pallas_src>
import jax
import jax.numpy as jnp
from jax.experimental import pallas as pl
from jax.experimental.pallas import tpu as pltpu


NEG_SLOPE = 0.01  # torch.nn.functional.leaky_relu default
LANE = 128
SUBLANE = 8


def _round_up(n, m):
    return ((n + m - 1) // m) * m


def _leaky_relu(x):
    # Identical to leaky_relu for 0 < slope < 1; lowers to vmul+vmax (no select).
    return jnp.maximum(x, NEG_SLOPE * x)


def critic_kernel(x_ref, w1_ref, w2_ref, bw_ref, o_ref):
    # x tile: (TB, 75) unpadded; weights are VMEM-resident across the whole grid.
    x = x_ref[...]

    b1 = bw_ref[0:1, :]        # (1, 128)  fc1 bias (zero-padded lanes H..127)
    b2 = bw_ref[1:2, :]        # (1, 128)  fc2 bias
    w3 = bw_ref[2:3, :]        # (1, 128)  fc3 weight row
    b3 = bw_ref[3:4, 0:1]      # (1, 1)    fc3 bias

    h1 = jnp.dot(x, w1_ref[...], preferred_element_type=jnp.float32) + b1
    h1 = _leaky_relu(h1)

    h2 = jnp.dot(h1, w2_ref[...], preferred_element_type=jnp.float32) + b2
    h2 = _leaky_relu(h2)

    # 128 -> 1 projection as VPU multiply + XLU lane reduction (no N=1 MXU matmul).
    out = jnp.sum(h2 * w3, axis=-1, keepdims=True) + b3
    o_ref[...] = out.astype(o_ref.dtype)


def critic_forward(x, params, *, block_batch=4096):
    """x: (B, input_size) float32. params: dict of w1,b1,w2,b2,w3,b3 with
    shapes (in,out) / (1,out)."""
    w1, b1, w2, b2, w3, b3 = (
        params["w1"], params["b1"], params["w2"],
        params["b2"], params["w3"], params["b3"],
    )
    B, F = x.shape
    H = w1.shape[1]
    N2 = w2.shape[1]
    assert w1.shape[0] == F
    assert N2 == 128 and w2.shape == (H, 128) and w3.shape == (128, 1)

    H_pad = _round_up(H, LANE)           # 32 -> 128 (keeps h1 lane-dense for fc2)

    # ---- batch tile selection ---------------------------------------------
    TB = _round_up(min(block_batch, _round_up(B, SUBLANE)), SUBLANE)
    num_tiles = pl.cdiv(B, TB)
    if num_tiles == 1 and TB >= 2 * SUBLANE:
        # Split a single-tile batch so the "parallel" grid axis can feed both
        # v7x TensorCores (free ~2x on small/medium batches).
        TB = _round_up(pl.cdiv(TB, 2), SUBLANE)
        num_tiles = pl.cdiv(B, TB)

    # ---- tiny weights padded once; x streamed unpadded ---------------------
    x = x.astype(jnp.float32)
    w1p = jnp.pad(w1, ((0, 0), (0, H_pad - H)))            # (75, 128)
    w2p = jnp.pad(w2, ((0, H_pad - H), (0, 0)))            # (128, 128)
    bw = jnp.concatenate(
        [
            jnp.pad(b1.reshape(1, H), ((0, 0), (0, H_pad - H))),   # fc1 bias
            b2.reshape(1, N2),                                     # fc2 bias
            w3.reshape(1, N2),                                     # fc3 weight row
            jnp.pad(b3.reshape(1, 1), ((0, 0), (0, N2 - 1))),      # fc3 bias
        ],
        axis=0,
    )                                                       # (4, 128)

    # ---- VMEM budget from tile math (capped at 48 MiB for v7x headroom) ----
    F_lane = _round_up(F, LANE)
    x_tile_bytes = TB * F_lane * 4
    out_tile_bytes = TB * LANE * 4                          # (TB,1) pads to 128 lanes
    weight_bytes = (F_lane * H_pad + H_pad * N2 + SUBLANE * N2) * 4
    live_bytes = 2 * TB * max(H_pad, N2) * 4                # h1 / h2 temporaries
    vmem_limit = (2 * x_tile_bytes + 2 * out_tile_bytes + 2 * weight_bytes
                  + live_bytes + (4 << 20))
    vmem_limit = int(min(max(vmem_limit, 8 << 20), 48 << 20))

    cost = pl.CostEstimate(
        flops=2 * B * (F * H_pad + H_pad * N2 + N2),
        transcendentals=0,
        bytes_accessed=(B * F + B) * 4 + weight_bytes,
    )

    out = pl.pallas_call(
        critic_kernel,
        out_shape=jax.ShapeDtypeStruct((B, 1), jnp.float32),
        grid=(num_tiles,),
        in_specs=[
            pl.BlockSpec((TB, F), lambda i: (i, 0)),        # x: streamed, unpadded
            pl.BlockSpec((F, H_pad), lambda i: (0, 0)),     # w1: VMEM-resident
            pl.BlockSpec((H_pad, N2), lambda i: (0, 0)),    # w2: VMEM-resident
            pl.BlockSpec((4, N2), lambda i: (0, 0)),        # b1|b2|w3row|b3 packed
        ],
        out_specs=pl.BlockSpec((TB, 1), lambda i: (i, 0)),
        compiler_params=pltpu.CompilerParams(
            dimension_semantics=("parallel",),              # megacore sharding
            vmem_limit_bytes=vmem_limit,
        ),
        cost_estimate=cost,
    )(x, w1p, w2p, bw)

    return out


def init_params(key, input_size, hidden_size):
    """Deterministic synthetic init matching nn.Linear shapes:
       fc1: (hidden, input), fc2: (128, hidden), fc3: (1, 128) — stored transposed."""
    ks = jax.random.split(key, 6)

    def uniform_init(k, shape, fan_in):
        bound = 1.0 / jnp.sqrt(fan_in)
        return jax.random.uniform(k, shape, jnp.float32, -bound, bound)

    w1 = uniform_init(ks[0], (input_size, hidden_size), input_size)
    b1 = uniform_init(ks[1], (1, hidden_size), input_size)
    w2 = uniform_init(ks[2], (hidden_size, 128), hidden_size)
    b2 = uniform_init(ks[3], (1, 128), hidden_size)
    w3 = uniform_init(ks[4], (128, 1), 128)
    b3 = uniform_init(ks[5], (1, 1), 128)
    return dict(w1=w1, b1=b1, w2=w2, b2=b2, w3=w3, b3=b3)


def reference_forward(x, p):
    h1 = jnp.maximum(x @ p["w1"] + p["b1"], NEG_SLOPE * (x @ p["w1"] + p["b1"]))
    h2 = jnp.maximum(h1 @ p["w2"] + p["b2"], NEG_SLOPE * (h1 @ p["w2"] + p["b2"]))
    return h2 @ p["w3"] + p["b3"]


if __name__ == "__main__":
    input_size = 75
    hidden_size = 32

    key = jax.random.PRNGKey(0)
    k_x, k_p, k_x2 = jax.random.split(key, 3)
    params = init_params(k_p, input_size, hidden_size)

    # Small exact-fit batch.
    batch = 8
    x = jax.random.normal(k_x, (batch, input_size), jnp.float32)
    out = jax.block_until_ready(critic_forward(x, params))
    ref = reference_forward(x, params)
    assert out.shape == (batch, 1), out.shape
    assert jnp.allclose(out, ref, atol=1e-5, rtol=1e-5), (out, ref)

    # Ragged batch: exercises the masked last tile (200 rows, TB=64 -> 4 tiles).
    batch2 = 200
    x2 = jax.random.normal(k_x2, (batch2, input_size), jnp.float32)
    out2 = jax.block_until_ready(critic_forward(x2, params, block_batch=64))
    ref2 = reference_forward(x2, params)
    assert out2.shape == (batch2, 1), out2.shape
    assert jnp.allclose(out2, ref2, atol=1e-5, rtol=1e-5), (out2, ref2)

    print("KERNEL_OK")
</pallas_src>

<mosaic_0001>
module attributes {stable_mosaic.version = 11 : i64} {
  func.func @critic_kernel(%arg0: i32, %arg1: memref<8x75xf32, #tpu.memory_space<vmem>>, %arg2: memref<75x128xf32, #tpu.memory_space<vmem>>, %arg3: memref<128x128xf32, #tpu.memory_space<vmem>>, %arg4: memref<4x128xf32, #tpu.memory_space<vmem>>, %arg5: memref<8x1xf32, #tpu.memory_space<vmem>>) attributes {dimension_semantics = [#tpu.dimension_semantics<parallel>], iteration_bounds = array<i64: 1>, scalar_prefetch = 0 : i64, scratch_operands = 0 : i64, tpu.core_type = #tpu.core_type<tc>, window_params = [{transform_indices = @transform_0, window_bounds = array<i64: 8, 75>}, {pipeline_mode = #tpu.pipeline_mode<synchronous>, transform_indices = @transform_1, window_bounds = array<i64: 75, 128>}, {pipeline_mode = #tpu.pipeline_mode<synchronous>, transform_indices = @transform_2, window_bounds = array<i64: 128, 128>}, {pipeline_mode = #tpu.pipeline_mode<synchronous>, transform_indices = @transform_3, window_bounds = array<i64: 4, 128>}, {transform_indices = @transform_4, window_bounds = array<i64: 8, 1>}]} {
    %c0 = arith.constant 0 : index
    %c0_0 = arith.constant 0 : index
    %0 = vector.load %arg1[%c0, %c0_0] : memref<8x75xf32, #tpu.memory_space<vmem>>, vector<8x75xf32>
    %c0_1 = arith.constant 0 : index
    %c0_2 = arith.constant 0 : index
    %1 = vector.load %arg4[%c0_1, %c0_2] : memref<4x128xf32, #tpu.memory_space<vmem>>, vector<1x128xf32>
    %c1 = arith.constant 1 : index
    %c0_3 = arith.constant 0 : index
    %2 = vector.load %arg4[%c1, %c0_3] : memref<4x128xf32, #tpu.memory_space<vmem>>, vector<1x128xf32>
    %c2 = arith.constant 2 : index
    %c0_4 = arith.constant 0 : index
    %3 = vector.load %arg4[%c2, %c0_4] : memref<4x128xf32, #tpu.memory_space<vmem>>, vector<1x128xf32>
    %c3 = arith.constant 3 : index
    %c0_5 = arith.constant 0 : index
    %4 = vector.load %arg4[%c3, %c0_5] : memref<4x128xf32, #tpu.memory_space<vmem>>, vector<1x1xf32>
    %c0_6 = arith.constant 0 : index
    %c0_7 = arith.constant 0 : index
    %5 = vector.load %arg2[%c0_6, %c0_7] : memref<75x128xf32, #tpu.memory_space<vmem>>, vector<75x128xf32>
    %cst = arith.constant dense<0.000000e+00> : vector<8x128xf32>
    %6 = tpu.matmul %0, %5, %cst {dimension_numbers = #tpu.dot_dimension_numbers<[1], [0], [0], [1], [0, 0, 1, 1], [], []>} : vector<8x75xf32>, vector<75x128xf32>, vector<8x128xf32> -> vector<8x128xf32>
    %7 = vector.broadcast %1 : vector<1x128xf32> to vector<8x128xf32>
    %8 = arith.addf %6, %7 : vector<8x128xf32>
    %cst_8 = arith.constant 0.00999999977 : f32
    %9 = vector.broadcast %cst_8 : f32 to vector<8x128xf32>
    %10 = arith.mulf %9, %8 : vector<8x128xf32>
    %11 = arith.maximumf %8, %10 : vector<8x128xf32>
    %c0_9 = arith.constant 0 : index
    %c0_10 = arith.constant 0 : index
    %12 = vector.load %arg3[%c0_9, %c0_10] : memref<128x128xf32, #tpu.memory_space<vmem>>, vector<128x128xf32>
    %cst_11 = arith.constant dense<0.000000e+00> : vector<8x128xf32>
    %13 = tpu.matmul %11, %12, %cst_11 {dimension_numbers = #tpu.dot_dimension_numbers<[1], [0], [0], [1], [0, 0, 1, 1], [], []>} : vector<8x128xf32>, vector<128x128xf32>, vector<8x128xf32> -> vector<8x128xf32>
    %14 = vector.broadcast %2 : vector<1x128xf32> to vector<8x128xf32>
    %15 = arith.addf %13, %14 : vector<8x128xf32>
    %cst_12 = arith.constant 0.00999999977 : f32
    %16 = vector.broadcast %cst_12 : f32 to vector<8x128xf32>
    %17 = arith.mulf %16, %15 : vector<8x128xf32>
    %18 = arith.maximumf %15, %17 : vector<8x128xf32>
    %19 = vector.broadcast %3 : vector<1x128xf32> to vector<8x128xf32>
    %20 = arith.mulf %18, %19 : vector<8x128xf32>
    %cst_13 = arith.constant dense<0.000000e+00> : vector<8xf32>
    %21 = vector.multi_reduction <add>, %20, %cst_13 [1] : vector<8x128xf32> to vector<8xf32>
    %22 = vector.shape_cast %21 : vector<8xf32> to vector<8x1xf32>
    %23 = vector.broadcast %4 : vector<1x1xf32> to vector<8x1xf32>
    %24 = arith.addf %22, %23 : vector<8x1xf32>
    %c0_14 = arith.constant 0 : index
    %c0_15 = arith.constant 0 : index
    %25 = vector.load %arg5[%c0_14, %c0_15] : memref<8x1xf32, #tpu.memory_space<vmem>>, vector<8x1xf32>
    tpu.vector_store %arg5[%c0_14, %c0_15], %24 {strides = array<i32>} : memref<8x1xf32, #tpu.memory_space<vmem>>, vector<8x1xf32>,
    return
  }
  func.func @transform_0(%arg0: i32) -> (i32, i32) {
    %c0_i32 = arith.constant 0 : i32
    %c0_i32_0 = arith.constant 0 : i32
    return %arg0, %c0_i32 : i32, i32
  }
  func.func @transform_1(%arg0: i32) -> (i32, i32) {
    %c0_i32 = arith.constant 0 : i32
    %c0_i32_0 = arith.constant 0 : i32
    %c0_i32_1 = arith.constant 0 : i32
    return %c0_i32, %c0_i32_0 : i32, i32
  }
  func.func @transform_2(%arg0: i32) -> (i32, i32) {
    %c0_i32 = arith.constant 0 : i32
    %c0_i32_0 = arith.constant 0 : i32
    %c0_i32_1 = arith.constant 0 : i32
    return %c0_i32, %c0_i32_0 : i32, i32
  }
  func.func @transform_3(%arg0: i32) -> (i32, i32) {
    %c0_i32 = arith.constant 0 : i32
    %c0_i32_0 = arith.constant 0 : i32
    %c0_i32_1 = arith.constant 0 : i32
    return %c0_i32, %c0_i32_0 : i32, i32
  }
  func.func @transform_4(%arg0: i32) -> (i32, i32) {
    %c0_i32 = arith.constant 0 : i32
    %c0_i32_0 = arith.constant 0 : i32
    return %arg0, %c0_i32 : i32, i32
  }
}

</mosaic_0001>

<bundles_post_ra>
// kernel: tpu_custom_call.1
= control target key start
LH: loop header
LB: loop body
LE: loop exit
PB: predicated region body
PF: predicated region fallthrough
CT: control target
= control target key end

     0   :  { %9 = vsyncpa [#allocation3], 0  ;;  %s514_s0 = inlined_call_operand.hbm [shape: f32[8,75], index: 0, kind: input, shape index: {}]   ;;  %s515_s1 = inlined_call_operand.hbm [shape: f32[75,128], index: 1, kind: input, shape index: {}]   ;;  %s516_s2 = inlined_call_operand.hbm [shape: f32[128,128], index: 2, kind: input, shape index: {}]   ;;  %s517_s3 = inlined_call_operand.vmem [shape: f32[4,128], index: 3, kind: input, shape index: {}]   ;;  %s518_s4 = inlined_call_operand.vmem [shape: f32[8,1], index: 4, kind: output, shape index: {}]  }
   0x1   :  { %10 = vsyncpa [#allocation5], 0  ;;  %s430_s15 = smov [#allocation4]  }
   0x2   :  { %s26_s16 = sshll.u32 %s430_s15, 4  ;;  %s27_s16 = int_to_ptr.vmem [resolvable:$true] %s26_s16 }
   0x3   :  { %s374_s17 = scalar_lea.vmem %s27_s16, 1280  ;;  %p379_p1 = scmp.lt.s32.totalorder %s27_s16, %s27_s16 }
   0x4   :  { %p375_p0 = scmp.ne.s32.totalorder %s27_s16, %s374_s17  ;;  %p380_p2 = scmp.lt.s32.totalorder %s374_s17, %s374_s17 }
   0x6   :  { %p381_p3 = por %p380_p2, %p379_p1 }
   0x8   :  { %p382_p4 = pnand %p381_p3, %p375_p0 }
   0xa   :  { %385 = shalt.err (!%p382_p4)
}
   0xb   :  { %s431_s18 = smov 128   ;;  %s432_s19 = smov 8  }
   0xc   :  { %32 = dma.hbm_to_vmem [thread:$0]  %s515_s1, 1280, %s27_s16, [#allocation5], %s431_s18, %s431_s18, %s432_s19  }
   0xd   :  { %s433_s22 = smov [#allocation2]   ;;  %s434_s24 = smov [#allocation6]  }
   0xe   :  { %s17_s23 = sshll.u32 %s433_s22, 4  ;;  %s38_s25 = sshll.u32 %s434_s24, 4  ;;  %s18_s23 = int_to_ptr.vmem [resolvable:$true] %s17_s23  ;;  %s39_s25 = int_to_ptr.vmem [resolvable:$true] %s38_s25 }
   0xf   :  { %s394_s26 = scalar_lea.vmem %s18_s23, 128  ;;  %p399_p6 = scmp.lt.s32.totalorder %s18_s23, %s18_s23 }
  0x10   :  { %p395_p5 = scmp.ne.s32.totalorder %s18_s23, %s394_s26  ;;  %p400_p7 = scmp.lt.s32.totalorder %s394_s26, %s394_s26 }
  0x12   :  { %p401_p8 = por %p400_p7, %p399_p6 }
  0x14   :  { %p402_p9 = pnand %p401_p8, %p395_p5 }
  0x16   :  { %405 = shalt.err (!%p402_p9)
}
  0x17   :  { %20 = dma.hbm_to_vmem [thread:$0]  %s514_s0, 128, %s18_s23, [#allocation3]  }
  0x18   :  { %s414_s29 = scalar_lea.vmem %s39_s25, 2048  ;;  %p419_p11 = scmp.lt.s32.totalorder %s39_s25, %s39_s25 }
  0x19   :  { %p415_p10 = scmp.ne.s32.totalorder %s39_s25, %s414_s29  ;;  %p420_p12 = scmp.lt.s32.totalorder %s414_s29, %s414_s29 }
  0x1b   :  { %p421_p13 = por %p420_p12, %p419_p11 }
  0x1d   :  { %p422_p0 = pnand %p421_p13, %p415_p10 }
  0x1f   :  { %425 = shalt.err (!%p422_p0)
}
  0x20   :  { %44 = dma.hbm_to_vmem [thread:$0]  %s516_s2, 2048, %s39_s25, [#allocation5], %s431_s18, %s431_s18, %s432_s19  }
  0x21   :  { %426 = dma.done.wait [#allocation3], 128  }
  0x22   :  { %427 = vsyncadd [#allocation3], 4294967168 }
  0x23   :  { %428 = dma.done.wait [#allocation5], 3328  }
  0x24   :  { %429 = vsyncadd [#allocation5], 4294963968  ;;  %v435_v0 = vmov 0.0   ;;  %vm436_vm0 = vmmov 0   ;;  %vm79_vm1 = vcmask 1042432   ;;  %v69_v2 = vld [vmem:[#allocation4 + $0x40] sm:$0xff] }
  0x25   :  { %301 = vmatprep.subr.mxu0 %v435_v0  ;;  %321 = vmatprep.mubr.msk.f32.mxu0 %vm436_vm0, %v435_v0  ;;  %v70_v1 = vld [vmem:[#allocation4 + $0x48] sm:$0x7]  ;;  %v68_v3 = vld [vmem:[#allocation4 + $0x38] sm:$0xff]  ;;  %v67_v5 = vld [vmem:[#allocation4 + $0x30] sm:$0xff]  ;;  %vm75_vm2 = vcmask 613376   ;;  %vm259_vm3 = vcmask 7168  }
  0x26   :  { %324 = vmatprep.subr.mxu1 %v435_v0  ;;  %356 = vmatprep.mubr.msk.f32.mxu1 %vm436_vm0, %v435_v0  ;;  %v170_v4 = vld [vmem:[#allocation6 + $0x78] sm:$0xff]  ;;  %v169_v6 = vld [vmem:[#allocation6 + $0x70] sm:$0xff]  ;;  %v168_v7 = vld [vmem:[#allocation6 + $0x68] sm:$0xff] }
  0x27   :  { %302 = vmatpush3.msk.msra.mxu0 %vm79_vm1, %v70_v1  ;;  %325 = vmatpush3.msra.mxu1 %v170_v4  ;;  %v66_v8 = vld [vmem:[#allocation4 + $0x28] sm:$0xff]  ;;  %v167_v9 = vld [vmem:[#allocation6 + $0x60] sm:$0xff]  ;;  %v65_v10 = vld [vmem:[#allocation4 + $0x20] sm:$0xff] }
  0x28   :  { %303 = vmatprep.subr.mxu0 %v435_v0  ;;  %326 = vmatprep.subr.mxu1 %v435_v0  ;;  %v166_v11 = vld [vmem:[#allocation6 + $0x58] sm:$0xff]  ;;  %v64_v12 = vld [vmem:[#allocation4 + $0x18] sm:$0xff]  ;;  %v165_v13 = vld [vmem:[#allocation6 + $0x50] sm:$0xff] }
  0x29   :  { %304 = vmatpush3.msra.mxu0 %v69_v2  ;;  %327 = vmatpush3.msra.mxu1 %v169_v6  ;;  %v63_v14 = vld [vmem:[#allocation4 + $0x10] sm:$0xff]  ;;  %v164_v15 = vld [vmem:[#allocation6 + $0x48] sm:$0xff]  ;;  %v62_v16 = vld [vmem:[#allocation4 + $0x8] sm:$0xff] }
  0x2a   :  { %305 = vmatprep.subr.mxu0 %v435_v0  ;;  %328 = vmatprep.subr.mxu1 %v435_v0  ;;  %v163_v17 = vld [vmem:[#allocation6 + $0x40] sm:$0xff]  ;;  %v61_v18 = vld [vmem:[#allocation4] sm:$0xff]  ;;  %v56_v19 = vld [vmem:[#allocation2] sm:$0xff] }
  0x2b   :  { %306 = vmatpush3.msra.mxu0 %v68_v3  ;;  %329 = vmatpush3.msra.mxu1 %v168_v7  ;;  %v162_v20 = vld [vmem:[#allocation6 + $0x38] sm:$0xff]  ;;  %v161_v21 = vld [vmem:[#allocation6 + $0x30] sm:$0xff]  ;;  %v160_v22 = vld [vmem:[#allocation6 + $0x28] sm:$0xff] }
  0x2c   :  { %307 = vmatprep.subr.mxu0 %v435_v0  ;;  %330 = vmatprep.subr.mxu1 %v435_v0  ;;  %v159_v23 = vld [vmem:[#allocation6 + $0x20] sm:$0xff]  ;;  %v158_v24 = vld [vmem:[#allocation6 + $0x18] sm:$0xff]  ;;  %v157_v25 = vld [vmem:[#allocation6 + $0x10] sm:$0xff] }
  0x2d   :  { %308 = vmatpush3.msra.mxu0 %v67_v5  ;;  %331 = vmatpush3.msra.mxu1 %v167_v9  ;;  %v156_v26 = vld [vmem:[#allocation6 + $0x8] sm:$0xff]  ;;  %v155_v27 = vld [vmem:[#allocation6] sm:$0xff] }
  0x2e   :  { %309 = vmatprep.subr.mxu0 %v435_v0  ;;  %332 = vmatprep.subr.mxu1 %v435_v0  ;;  %v267_v28 = vld [vmem:[%s517_s3] ss:$0 sm:$0xff]  ;;  %v270_v34 = vld [vmem:[%s517_s3 + $0x1] ss:$0 sm:$0xff]  ;;  %v271_v39 = vld [vmem:[%s517_s3 + $0x2] ss:$0 sm:$0xff] }
  0x2f   :  { %310 = vmatpush3.msra.mxu0 %v66_v8  ;;  %333 = vmatpush3.msra.mxu1 %v166_v11  ;;  %v272_v42 = vld [vmem:[%s517_s3 + $0x3] ss:$0 sm:$0xff] }
  0x30   :  { %311 = vmatprep.subr.mxu0 %v435_v0  ;;  %334 = vmatprep.subr.mxu1 %v435_v0 }
  0x31   :  { %312 = vmatpush3.msra.mxu0 %v65_v10  ;;  %335 = vmatpush3.msra.mxu1 %v165_v13 }
  0x32   :  { %313 = vmatprep.subr.mxu0 %v435_v0  ;;  %336 = vmatprep.subr.mxu1 %v435_v0 }
  0x33   :  { %314 = vmatpush3.msra.mxu0 %v64_v12  ;;  %337 = vmatpush3.msra.mxu1 %v164_v15 }
  0x34   :  { %315 = vmatprep.subr.mxu0 %v435_v0  ;;  %338 = vmatprep.subr.mxu1 %v435_v0 }
  0x35   :  { %316 = vmatpush3.msra.mxu0 %v63_v14  ;;  %339 = vmatpush3.msra.mxu1 %v163_v17 }
  0x36   :  { %317 = vmatprep.subr.mxu0 %v435_v0  ;;  %340 = vmatprep.subr.mxu1 %v435_v0 }
  0x37   :  { %318 = vmatpush3.msra.mxu0 %v62_v16  ;;  %341 = vmatpush3.msra.mxu1 %v162_v20 }
  0x38   :  { %319 = vmatprep.subr.mxu0 %v435_v0  ;;  %342 = vmatprep.subr.mxu1 %v435_v0 }
  0x39   :  { %320 = vmatpush3.msra.mxu0 %v61_v18  ;;  %343 = vmatpush3.msra.mxu1 %v161_v21 }
  0x3a   :  { %322 = vmatmul.mubr.msk.f32.vlgmr.msra.gmra.mxu0 %vm75_vm2, %v56_v19  ;;  %344 = vmatprep.subr.mxu1 %v435_v0 }
  0x3b   :  { %345 = vmatpush3.msra.mxu1 %v160_v22 }
  0x3c   :  { %346 = vmatprep.subr.mxu1 %v435_v0 }
  0x3d   :  { %347 = vmatpush3.msra.mxu1 %v159_v23 }
  0x3e   :  { %348 = vmatprep.subr.mxu1 %v435_v0 }
  0x3f   :  { %349 = vmatpush3.msra.mxu1 %v158_v24 }
  0x40   :  { %350 = vmatprep.subr.mxu1 %v435_v0 }
  0x41   :  { %351 = vmatpush3.msra.mxu1 %v157_v25 }
  0x42   :  { %352 = vmatprep.subr.mxu1 %v435_v0 }
  0x43   :  { %353 = vmatpush3.msra.mxu1 %v156_v26 }
  0x44   :  { %354 = vmatprep.subr.mxu1 %v435_v0 }
  0x45   :  { %355 = vmatpush3.msra.mxu1 %v155_v27 }
  0xfa   :  { %v149_v29 = vpop.f32.mrf.mxu0 }
  0xfb   :  { %v150_v30 = vadd.f32 %v267_v28, %v149_v29 }
  0xfc   :  { %v323_v31 = vpop.f32.mrf.mxu0 }
  0xfd   :  { %v153_v32 = vmul.f32 0.01, %v150_v30 }
  0xff   :  { %v154_v33 = vmax.f32 %v150_v30, %v153_v32 }
 0x101   :  { %357 = vmatmul.mubr.f32.vlgmr.msra.gmra.mxu1 %v154_v33 }
 0x1c1   :  { %v241_v35 = vpop.f32.mrf.mxu1 }
 0x1c2   :  { %v242_v36 = vadd.f32 %v270_v34, %v241_v35 }
 0x1c3   :  { %v358_v37 = vpop.f32.mrf.mxu1 }
 0x1c4   :  { %v245_v38 = vmul.f32 0.01, %v242_v36 }
 0x1c6   :  { %v246_v40 = vmax.f32 %v242_v36, %v245_v38 }
 0x1c8   :  { %v251_v41 = vmul.f32 %v271_v39, %v246_v40 }
 0x1ca   :  { %252 = vadd.xlane.f32.xlu0 %v251_v41 }
 0x253   :  { %v253_v43 = vpop.xlane.xlu0 %252 }
 0x254   :  { %v258_v44 = vadd.f32 %v272_v42, %v253_v43 }
 0x256   :  { %260 = vst.msk [vmem:[%s518_s4] sm:$0xff] %vm259_vm3, %v258_v44 }
 0x257   :  { %265 = vsyncpa [#allocation3], 1 }
 0x258   :  { %266 = vsyncpa [#allocation5], 1 }

</bundles_post_ra>
